<compile_context>
chip_gen: v5e
topology: v5e:2x2
jax: 0.10.0
libtpu: 0.0.40
codegen_flags: <defaults>
</compile_context>

<pallas_src>
import jax
import jax.numpy as jnp
import numpy as np
from jax.experimental import pallas as pl
from jax.experimental.pallas import tpu as pltpu


# ----------------------------- Pallas kernel --------------------------------
def _fcnn_kernel(x_ref, w1_ref, b1_ref, w2_ref, b2_ref, w3_ref, b3_ref, o_ref):
    # Fused 3-layer MLP on one batch tile.  Matmuls hit the MXU with f32
    # accumulation; bias-add / ReLU run on the VPU in f32.
    x = x_ref[...]

    h = jnp.dot(x, w1_ref[...], preferred_element_type=jnp.float32) + b1_ref[...]
    h = jnp.maximum(h, 0.0)
    # TODO(synk): nn.Dropout is a no-op in eval/inference mode; training-mode RNG
    #             masking (pltpu.prng_seed / prng_random_bits) intentionally omitted.

    h = h.astype(w2_ref.dtype)  # no-op in f32 mode; feeds MXU-native dtype in bf16 mode
    h = jnp.dot(h, w2_ref[...], preferred_element_type=jnp.float32) + b2_ref[...]
    h = jnp.maximum(h, 0.0)

    h = h.astype(w3_ref.dtype)
    out = jnp.dot(h, w3_ref[...], preferred_element_type=jnp.float32) + b3_ref[...]
    o_ref[...] = out.astype(o_ref.dtype)


def _round_up(x, m):
    return ((x + m - 1) // m) * m


def fcnn_forward(
    x,
    params,
    *,
    max_tile_b=2048,
    vmem_budget_bytes=24 * 1024 * 1024,
    min_grid_steps=2,
    use_bf16=False,
):
    """x: (B, ...) -> flattened to (B, F).  params = [(W1,b1),(W2,b2),(W3,b3)]
    with W_i of shape (in, out) and b_i of shape (1, out)."""
    B = x.shape[0]
    xf = x.reshape(B, -1)
    F = xf.shape[1]

    (w1, b1), (w2, b2), (w3, b3) = params
    H1, H2, O = w1.shape[1], w2.shape[1], w3.shape[1]

    out_dtype = xf.dtype
    out_itemsize = jnp.dtype(out_dtype).itemsize

    # Optional bf16 compute path: halves x-tile HBM traffic and feeds the MXU its
    # native dtype on v6e/v7x.  Biases stay f32 (added to the f32 accumulator).
    compute_dtype = jnp.bfloat16 if use_bf16 else xf.dtype
    if use_bf16:
        xf = xf.astype(compute_dtype)
        w1 = w1.astype(compute_dtype)
        w2 = w2.astype(compute_dtype)
        w3 = w3.astype(compute_dtype)
    itemsize = jnp.dtype(compute_dtype).itemsize

    lane = lambda n: _round_up(n, 128)  # VMEM lane padding of the last dim

    def vmem_bytes(tb):
        # Double-buffered x / out tiles (lane-padded widths), double-buffered
        # (grid-invariant, tiny) weights+biases, plus live f32 intermediates h1/h2.
        io = 2 * tb * lane(F) * itemsize + 2 * tb * lane(O) * out_itemsize
        weights = 2 * (
            (_round_up(F, 8) * lane(H1)
             + _round_up(H1, 8) * lane(H2)
             + _round_up(H2, 8) * lane(O)) * itemsize
            + (lane(H1) + lane(H2) + lane(O)) * 4
        )
        inter = tb * (lane(H1) + lane(H2)) * 4
        return io + weights + inter

    # ---- choose batch tile -------------------------------------------------
    max_tile_b = max(8, (max_tile_b // 8) * 8)  # keep cap a multiple of 8

    if B <= max_tile_b:
        if B >= 16 and min_grid_steps > 1:
            # Split the batch into >=2 parallel grid steps so v7x's two TensorCores
            # both get work; the extra step is essentially free on v5e/v6e.
            tile_b = _round_up(pl.cdiv(B, min_grid_steps), 8)
        else:
            tile_b = B  # block == full batch dim -> single grid step
    else:
        tile_b = max_tile_b

    # Shrink (in multiples of 8) until the per-step working set fits the budget.
    while tile_b > 8 and vmem_bytes(tile_b) > vmem_budget_bytes:
        tile_b = max(8, _round_up(tile_b // 2, 8))

    Bp = _round_up(B, tile_b)
    if Bp != B:
        xf = jnp.pad(xf, ((0, Bp - B), (0, 0)))  # zero rows -> sliced off below

    grid = (Bp // tile_b,)

    # Scoped-VMEM limit: enough headroom over the budget, but <= 48 MiB so it stays
    # inside v7x's 64 MiB physical VMEM (v5e/v6e have 128 MiB).
    vmem_limit_bytes = min(max(32 * 1024 * 1024, vmem_budget_bytes + (8 << 20)),
                           48 * 1024 * 1024)

    # Weights/biases are small and grid-invariant: present them as whole blocks.
    full2d = lambda r, c: pl.BlockSpec((r, c), lambda i: (0, 0))

    out = pl.pallas_call(
        _fcnn_kernel,
        out_shape=jax.ShapeDtypeStruct((Bp, O), out_dtype),
        grid_spec=pltpu.PrefetchScalarGridSpec(
            num_scalar_prefetch=0,
            grid=grid,
            in_specs=[
                pl.BlockSpec((tile_b, F), lambda i: (i, 0)),  # x tile (F = full last dim)
                full2d(F, H1), full2d(1, H1),                 # layer 1
                full2d(H1, H2), full2d(1, H2),                # layer 2
                full2d(H2, O), full2d(1, O),                  # output layer
            ],
            out_specs=pl.BlockSpec((tile_b, O), lambda i: (i, 0)),
        ),
        compiler_params=pltpu.CompilerParams(
            # batch axis is embarrassingly parallel -> shards across TensorCores
            # whenever the grid has >= 2 steps.
            dimension_semantics=("parallel",),
            vmem_limit_bytes=vmem_limit_bytes,
        ),
    )(xf, w1, b1, w2, b2, w3, b3)

    if Bp != B:
        out = out[:B]
    return out


# --------------------------- parameter creation ------------------------------
def init_params(key, input_size, hidden_sizes, output_size, dtype=jnp.float32):
    """Deterministic synthetic init (Kaiming-uniform-like, matching nn.Linear shapes)."""
    sizes = [input_size] + list(hidden_sizes) + [output_size]
    params = []
    for i in range(len(sizes) - 1):
        fan_in, fan_out = sizes[i], sizes[i + 1]
        key, kw, kb = jax.random.split(key, 3)
        bound = 1.0 / np.sqrt(fan_in)
        w = jax.random.uniform(kw, (fan_in, fan_out), dtype, -bound, bound)
        b = jax.random.uniform(kb, (1, fan_out), dtype, -bound, bound)
        params.append((w, b))
    return params


# ------------------------------ reference ------------------------------------
def fcnn_reference(x, params):
    h = x.reshape(x.shape[0], -1)
    for i, (w, b) in enumerate(params):
        h = h @ w + b
        if i < len(params) - 1:
            h = jnp.maximum(h, 0.0)  # dropout identity at inference
    return h


# --------------------------------- main ---------------------------------------
if __name__ == "__main__":
    # FCNNModel(input_size=75, output_size=32, hidden_sizes=[128, 64], dropout=0.1)
    # Input mimics a batch of 3D joints: (B, 25 joints, 3 coords) -> flattened to 75.
    B, J, C = 16, 25, 3
    input_size = J * C
    hidden_sizes = [128, 64]
    output_size = 32

    key = jax.random.PRNGKey(0)
    key, kx = jax.random.split(key)
    x = jax.random.normal(kx, (B, J, C), jnp.float32)

    params = init_params(key, input_size, hidden_sizes, output_size)

    out = fcnn_forward(x, params)   # B=16 -> tile_b=8, grid=(2,), both cores on v7x
    out = jax.block_until_ready(out)

    ref = fcnn_reference(x, params)
    np.testing.assert_allclose(np.asarray(out), np.asarray(ref), rtol=1e-5, atol=1e-5)

    print("KERNEL_OK")
</pallas_src>

<mosaic_0001>
module attributes {stable_mosaic.version = 11 : i64} {
  func.func @_fcnn_kernel(%arg0: i32, %arg1: memref<8x75xf32, #tpu.memory_space<vmem>>, %arg2: memref<75x128xf32, #tpu.memory_space<vmem>>, %arg3: memref<1x128xf32, #tpu.memory_space<vmem>>, %arg4: memref<128x64xf32, #tpu.memory_space<vmem>>, %arg5: memref<1x64xf32, #tpu.memory_space<vmem>>, %arg6: memref<64x32xf32, #tpu.memory_space<vmem>>, %arg7: memref<1x32xf32, #tpu.memory_space<vmem>>, %arg8: memref<8x32xf32, #tpu.memory_space<vmem>>) attributes {dimension_semantics = [#tpu.dimension_semantics<parallel>], iteration_bounds = array<i64: 2>, scalar_prefetch = 0 : i64, scratch_operands = 0 : i64, tpu.core_type = #tpu.core_type<tc>, window_params = [{transform_indices = @transform_0, window_bounds = array<i64: 8, 75>}, {pipeline_mode = #tpu.pipeline_mode<synchronous>, transform_indices = @transform_1, window_bounds = array<i64: 75, 128>}, {pipeline_mode = #tpu.pipeline_mode<synchronous>, transform_indices = @transform_2, window_bounds = array<i64: 1, 128>}, {pipeline_mode = #tpu.pipeline_mode<synchronous>, transform_indices = @transform_3, window_bounds = array<i64: 128, 64>}, {pipeline_mode = #tpu.pipeline_mode<synchronous>, transform_indices = @transform_4, window_bounds = array<i64: 1, 64>}, {pipeline_mode = #tpu.pipeline_mode<synchronous>, transform_indices = @transform_5, window_bounds = array<i64: 64, 32>}, {pipeline_mode = #tpu.pipeline_mode<synchronous>, transform_indices = @transform_6, window_bounds = array<i64: 1, 32>}, {transform_indices = @transform_7, window_bounds = array<i64: 8, 32>}]} {
    %c0 = arith.constant 0 : index
    %c0_0 = arith.constant 0 : index
    %0 = vector.load %arg1[%c0, %c0_0] : memref<8x75xf32, #tpu.memory_space<vmem>>, vector<8x75xf32>
    %c0_1 = arith.constant 0 : index
    %c0_2 = arith.constant 0 : index
    %1 = vector.load %arg2[%c0_1, %c0_2] : memref<75x128xf32, #tpu.memory_space<vmem>>, vector<75x128xf32>
    %cst = arith.constant dense<0.000000e+00> : vector<8x128xf32>
    %2 = tpu.matmul %0, %1, %cst {dimension_numbers = #tpu.dot_dimension_numbers<[1], [0], [0], [1], [0, 0, 1, 1], [], []>} : vector<8x75xf32>, vector<75x128xf32>, vector<8x128xf32> -> vector<8x128xf32>
    %c0_3 = arith.constant 0 : index
    %c0_4 = arith.constant 0 : index
    %3 = vector.load %arg3[%c0_3, %c0_4] : memref<1x128xf32, #tpu.memory_space<vmem>>, vector<1x128xf32>
    %4 = vector.broadcast %3 : vector<1x128xf32> to vector<8x128xf32>
    %5 = arith.addf %2, %4 : vector<8x128xf32>
    %cst_5 = arith.constant 0.000000e+00 : f32
    %6 = vector.broadcast %cst_5 : f32 to vector<8x128xf32>
    %7 = arith.maximumf %5, %6 : vector<8x128xf32>
    %c0_6 = arith.constant 0 : index
    %c0_7 = arith.constant 0 : index
    %8 = vector.load %arg4[%c0_6, %c0_7] : memref<128x64xf32, #tpu.memory_space<vmem>>, vector<128x64xf32>
    %cst_8 = arith.constant dense<0.000000e+00> : vector<8x64xf32>
    %9 = tpu.matmul %7, %8, %cst_8 {dimension_numbers = #tpu.dot_dimension_numbers<[1], [0], [0], [1], [0, 0, 1, 1], [], []>} : vector<8x128xf32>, vector<128x64xf32>, vector<8x64xf32> -> vector<8x64xf32>
    %c0_9 = arith.constant 0 : index
    %c0_10 = arith.constant 0 : index
    %10 = vector.load %arg5[%c0_9, %c0_10] : memref<1x64xf32, #tpu.memory_space<vmem>>, vector<1x64xf32>
    %11 = vector.broadcast %10 : vector<1x64xf32> to vector<8x64xf32>
    %12 = arith.addf %9, %11 : vector<8x64xf32>
    %cst_11 = arith.constant 0.000000e+00 : f32
    %13 = vector.broadcast %cst_11 : f32 to vector<8x64xf32>
    %14 = arith.maximumf %12, %13 : vector<8x64xf32>
    %c0_12 = arith.constant 0 : index
    %c0_13 = arith.constant 0 : index
    %15 = vector.load %arg6[%c0_12, %c0_13] : memref<64x32xf32, #tpu.memory_space<vmem>>, vector<64x32xf32>
    %cst_14 = arith.constant dense<0.000000e+00> : vector<8x32xf32>
    %16 = tpu.matmul %14, %15, %cst_14 {dimension_numbers = #tpu.dot_dimension_numbers<[1], [0], [0], [1], [0, 0, 1, 1], [], []>} : vector<8x64xf32>, vector<64x32xf32>, vector<8x32xf32> -> vector<8x32xf32>
    %c0_15 = arith.constant 0 : index
    %c0_16 = arith.constant 0 : index
    %17 = vector.load %arg7[%c0_15, %c0_16] : memref<1x32xf32, #tpu.memory_space<vmem>>, vector<1x32xf32>
    %18 = vector.broadcast %17 : vector<1x32xf32> to vector<8x32xf32>
    %19 = arith.addf %16, %18 : vector<8x32xf32>
    %c0_17 = arith.constant 0 : index
    %c0_18 = arith.constant 0 : index
    %20 = vector.load %arg8[%c0_17, %c0_18] : memref<8x32xf32, #tpu.memory_space<vmem>>, vector<8x32xf32>
    tpu.vector_store %arg8[%c0_17, %c0_18], %19 {strides = array<i32>} : memref<8x32xf32, #tpu.memory_space<vmem>>, vector<8x32xf32>,
    return
  }
  func.func @transform_0(%arg0: i32) -> (i32, i32) {
    %c0_i32 = arith.constant 0 : i32
    %c0_i32_0 = arith.constant 0 : i32
    return %arg0, %c0_i32 : i32, i32
  }
  func.func @transform_1(%arg0: i32) -> (i32, i32) {
    %c0_i32 = arith.constant 0 : i32
    %c0_i32_0 = arith.constant 0 : i32
    %c0_i32_1 = arith.constant 0 : i32
    return %c0_i32, %c0_i32_0 : i32, i32
  }
  func.func @transform_2(%arg0: i32) -> (i32, i32) {
    %c0_i32 = arith.constant 0 : i32
    %c0_i32_0 = arith.constant 0 : i32
    %c0_i32_1 = arith.constant 0 : i32
    return %c0_i32, %c0_i32_0 : i32, i32
  }
  func.func @transform_3(%arg0: i32) -> (i32, i32) {
    %c0_i32 = arith.constant 0 : i32
    %c0_i32_0 = arith.constant 0 : i32
    %c0_i32_1 = arith.constant 0 : i32
    return %c0_i32, %c0_i32_0 : i32, i32
  }
  func.func @transform_4(%arg0: i32) -> (i32, i32) {
    %c0_i32 = arith.constant 0 : i32
    %c0_i32_0 = arith.constant 0 : i32
    %c0_i32_1 = arith.constant 0 : i32
    return %c0_i32, %c0_i32_0 : i32, i32
  }
  func.func @transform_5(%arg0: i32) -> (i32, i32) {
    %c0_i32 = arith.constant 0 : i32
    %c0_i32_0 = arith.constant 0 : i32
    %c0_i32_1 = arith.constant 0 : i32
    return %c0_i32, %c0_i32_0 : i32, i32
  }
  func.func @transform_6(%arg0: i32) -> (i32, i32) {
    %c0_i32 = arith.constant 0 : i32
    %c0_i32_0 = arith.constant 0 : i32
    %c0_i32_1 = arith.constant 0 : i32
    return %c0_i32, %c0_i32_0 : i32, i32
  }
  func.func @transform_7(%arg0: i32) -> (i32, i32) {
    %c0_i32 = arith.constant 0 : i32
    %c0_i32_0 = arith.constant 0 : i32
    return %arg0, %c0_i32 : i32, i32
  }
}

</mosaic_0001>

<bundles_post_ra>
// kernel: tpu_custom_call.1
= control target key start
LH: loop header
LB: loop body
LE: loop exit
PB: predicated region body
PF: predicated region fallthrough
CT: control target
= control target key end

     0   :  { %12 = vsyncpa [#allocation3], 0  ;;  %s827_s0 = inlined_call_operand.vmem [shape: f32[16,75], index: 0, kind: input, shape index: {}]   ;;  %s828_s1 = inlined_call_operand.vmem [shape: f32[75,128], index: 1, kind: input, shape index: {}]   ;;  %s829_s2 = inlined_call_operand.vmem [shape: f32[1,128], index: 2, kind: input, shape index: {}]   ;;  %s830_s3 = inlined_call_operand.vmem [shape: f32[128,64], index: 3, kind: input, shape index: {}]   ;;  %s831_s4 = inlined_call_operand.vmem [shape: f32[1,64], index: 4, kind: input, shape index: {}]   ;;  %s832_s5 = inlined_call_operand.vmem [shape: f32[64,32], index: 5, kind: input, shape index: {}]   ;;  %s833_s6 = inlined_call_operand.vmem [shape: f32[1,32], index: 6, kind: input, shape index: {}]   ;;  %s834_s7 = inlined_call_operand.hbm [shape: f32[16,32], index: 7, kind: output, shape index: {}]  }
   0x1   :  { %14 = vsyncpa [#allocation3 + $0x1], 0  ;;  %s631_s24 = smov 0   ;;  %s633_s25 = smov 0  }
   0x2   :  { %s635_s26 = smov 0   ;;  %s637_s27 = smov 0  }
   0x3 LB: > { %s652_s28 = sadd.s32 4294967295, %s589_s27   ;;  %s472_s29 = sadd.s32 4294967294, %s589_s27   ;;  %s589_s27 = sphi %s637_s27, %s840_s27   ;;  %s585_s26 = sphi %s635_s26, %s839_s26   ;;  %s581_s25 = sphi %s633_s25, %s838_s25   ;;  %s577_s24 = sphi %s631_s24, %s837_s24  }
   0x4   : > { %s656_s30 = sadd.s32 1, %s589_s27   ;;  %s179_s8 = sadd.s32 1, %s585_s26 }
   0x5   : > { %s176_s9 = ssub.s32 %s589_s27, %s656_s30  ;;  %p189_p0 = scmp.ne.s32.totalorder %s585_s26, %s581_s25 }
   0x6   : > { %p177_p1 = scmp.eq.s32.totalorder %s176_s9, 0  ;;  %p190_p2 = scmp.eq.s32.totalorder %s652_s28, 1 }
   0x7   : > { %p195_p3 = scmp.ne.s32.totalorder %s581_s25, %s577_s24  ;;  %p196_p4 = scmp.eq.s32.totalorder %s472_s29, 1 }
   0x8   : > { %s667_s10 = scalar_select %p177_p1, %s585_s26, %s179_s8  }
   0x9   : > { %p669_p5 = por %p190_p2, %p189_p0  ;;  %p673_p6 = por %p196_p4, %p195_p3 }
   0xa   : > { %p475_p7 = scmp.ge.s32.totalorder %s589_s27, 1  ;;  %p239_p8 = scmp.lt.s32.totalorder %s589_s27, 3 }
   0xc   : > { %p240_p9 = pnand %p475_p7, %p239_p8 }
   0xd   : > { %p270_p10 = scmp.lt.s32.totalorder (!%p240_p9), %s652_s28, 1  ;;  %s482_s22 = sshll.u32 (!%p240_p9), %s652_s28, 3 }
   0xe   : > { %243 = sbr.rel (%p240_p9) target bundleno = 436 (0x1b4), region = 48  ;;  %s408_s9 = scalar_lea.hbm (!%p240_p9), %s834_s7, %s482_s22 }
   0xf   : > { %s412_s17 = sshll.u32 (!%p240_p9), %s408_s9, 4  ;;  %s413_s17 = int_to_ptr.hbm [resolvable:$true] %s412_s17 }
  0x13   : > { %v284_v0 = vld [vmem:[%s828_s1 + $0x48] sm:$0x7]  ;;  %vm293_vm0 = vcmask 1042432   ;;  %v283_v1 = vld [vmem:[%s828_s1 + $0x40] sm:$0xff]  ;;  %v282_v2 = vld [vmem:[%s828_s1 + $0x38] sm:$0xff]  ;;  %s271_s15 = scalar_select %p270_p10, %s652_s28, 1 }
  0x14   : > { %478 = vmatpush.msk.msra.mxu0 %vm293_vm0, %v284_v0  ;;  %v333_v3 = vld [vmem:[%s830_s3 + $0x78] sm:$0xff]  ;;  %v332_v4 = vld [vmem:[%s830_s3 + $0x70] sm:$0xff]  ;;  %v331_v6 = vld [vmem:[%s830_s3 + $0x68] sm:$0xff]  ;;  %vm289_vm1 = vcmask 613376   ;;  %vm371_vm2 = vcmask 523264   ;;  %vm395_vm3 = vcmask 261120  }
  0x15   : > { %v281_v5 = vld [vmem:[%s828_s1 + $0x30] sm:$0xff]  ;;  %338 = vmatpush.msra.mxu1 %v333_v3  ;;  %v280_v7 = vld [vmem:[%s828_s1 + $0x28] sm:$0xff]  ;;  %v330_v8 = vld [vmem:[%s830_s3 + $0x60] sm:$0xff]  ;;  %s477_s29 = sshll.u32 %s271_s15, 3  ;;  %s267_s15 = sand.u32 1, %s581_s25  }
  0x16   : > { %304 = vmatpush.msra.mxu0 %v283_v1  ;;  %v279_v9 = vld [vmem:[%s828_s1 + $0x20] sm:$0xff]  ;;  %v329_v10 = vld [vmem:[%s830_s3 + $0x58] sm:$0xff]  ;;  %v328_v12 = vld [vmem:[%s830_s3 + $0x50] sm:$0xff]  ;;  %s273_s21 = scalar_lea.vmem %s827_s0, %s477_s29  ;;  %s398_s18 = scalar_lea.sflag [#allocation3], %s267_s15 }
  0x17   : > { %339 = vmatpush.msra.mxu1 %v332_v4  ;;  %v278_v11 = vld [vmem:[%s828_s1 + $0x18] sm:$0xff]  ;;  %v277_v13 = vld [vmem:[%s828_s1 + $0x10] sm:$0xff]  ;;  %v327_v14 = vld [vmem:[%s830_s3 + $0x48] sm:$0xff]  ;;  %s541_s28 = sshra.s32 %s413_s17, 4  ;;  %s542_s28 = int_to_ptr.hbm [resolvable:$true] %s541_s28 }
  0x18   : > { %305 = vmatpush.msra.mxu0 %v282_v2  ;;  %v276_v15 = vld [vmem:[%s828_s1 + $0x8] sm:$0xff]  ;;  %v326_v16 = vld [vmem:[%s830_s3 + $0x40] sm:$0xff]  ;;  %v325_v19 = vld [vmem:[%s830_s3 + $0x38] sm:$0xff]  ;;  %s543_s19 = scalar_lea.hbm %s542_s28, 8  ;;  %p548_p0 = scmp.lt.s32.totalorder %s542_s28, %s834_s7 }
  0x19   : > { %340 = vmatpush.msra.mxu1 %v331_v6  ;;  %v275_v17 = vld [vmem:[%s828_s1] sm:$0xff]  ;;  %v324_v20 = vld [vmem:[%s830_s3 + $0x30] sm:$0xff]  ;;  %v323_v21 = vld [vmem:[%s830_s3 + $0x28] sm:$0xff]  ;;  %p544_p11 = scmp.ne.s32.totalorder %s542_s28, %s543_s19 }
  0x1a   : > { %306 = vmatpush.msra.mxu0 %v281_v5  ;;  %v274_v18 = vld [vmem:[%s273_s21] sm:$0xff]  ;;  %v321_v23 = vld [vmem:[%s830_s3 + $0x18] sm:$0xff]  ;;  %v320_v24 = vld [vmem:[%s830_s3 + $0x10] sm:$0xff]  ;;  %s476_s21 = sshll.u32 %s267_s15, 3 }
  0x1b   : > { %341 = vmatpush.msra.mxu1 %v330_v8  ;;  %v322_v22 = vld [vmem:[%s830_s3 + $0x20] sm:$0xff]  ;;  %v319_v25 = vld [vmem:[%s830_s3 + $0x8] sm:$0xff]  ;;  %v366_v27 = vld [vmem:[%s832_s5 + $0x38] sm:$0xff]  ;;  %s269_s29 = scalar_lea.vmem [#allocation2], %s476_s21  ;;  %p545_p12 = pnand %p544_p11, %p669_p5 }
  0x1c   : > { %307 = vmatpush.msra.mxu0 %v280_v7  ;;  %v318_v26 = vld [vmem:[%s830_s3] sm:$0xff]  ;;  %v365_v28 = vld [vmem:[%s832_s5 + $0x30] sm:$0xff]  ;;  %383 = vmatpush.msra.mxu2 %v366_v27  ;;  %v364_v29 = vld [vmem:[%s832_s5 + $0x28] sm:$0xff]  ;;  %s410_s16 = sshll.u32 %s269_s29, 4  ;;  %s547_s21 = scalar_lea.hbm %s834_s7, 16  ;;  %s411_s16 = int_to_ptr.vmem [resolvable:$true] %s410_s16 }
  0x1d   : > { %342 = vmatpush.msra.mxu1 %v329_v10  ;;  %v363_v30 = vld [vmem:[%s832_s5 + $0x20] sm:$0xff]  ;;  %v362_v31 = vld [vmem:[%s832_s5 + $0x18] sm:$0xff]  ;;  %v361_v36 = vld [vmem:[%s832_s5 + $0x10] sm:$0xff]  ;;  %p546_p13 = pneg %p545_p12  ;;  %p549_p1 = scmp.lt.s32.totalorder %s547_s21, %s543_s19 }
  0x1e   : > { %308 = vmatpush.msra.mxu0 %v279_v9  ;;  %384 = vmatpush.msra.mxu2 %v365_v28  ;;  %v524_v32 = vld [vmem:[%s829_s2] ss:$0 sm:$0xff]  ;;  %v360_v37 = vld [vmem:[%s832_s5 + $0x8] sm:$0xff] }
  0x1f   : > { %343 = vmatpush.msra.mxu1 %v328_v12  ;;  %v359_v38 = vld [vmem:[%s832_s5] sm:$0xff]  ;;  %p550_p2 = por %p549_p1, %p548_p0 }
  0x20   : > { %309 = vmatpush.msra.mxu0 %v278_v11  ;;  %385 = vmatpush.msra.mxu2 %v364_v29  ;;  %v525_v39 = vld [vmem:[%s831_s4] ss:$0 sm:$0xff] }
  0x21   : > { %344 = vmatpush.msra.mxu1 %v327_v14  ;;  %v526_v43 = vld [vmem:[%s833_s6] ss:$0 sm:$0xff]  ;;  %p551_p3 = pnand %p550_p2, %p546_p13 }
  0x22   : > { %310 = vmatpush.msra.mxu0 %v277_v13  ;;  %386 = vmatpush.msra.mxu2 %v363_v30 }
  0x23   : > { %345 = vmatpush.msra.mxu1 %v326_v16 }
  0x24   : > { %311 = vmatpush.msra.mxu0 %v276_v15  ;;  %387 = vmatpush.msra.mxu2 %v362_v31 }
  0x25   : > { %346 = vmatpush.msra.mxu1 %v325_v19 }
  0x26   : > { %312 = vmatpush.msra.mxu0 %v275_v17  ;;  %388 = vmatpush.msra.mxu2 %v361_v36 }
  0x27   : > { %479 = vmatmul.msk.f32.vlgmr.msra.gmra.mxu0 %vm289_vm1, %v274_v18  ;;  %347 = vmatpush.msra.mxu1 %v324_v20 }
  0x28   : > { %389 = vmatpush.msra.mxu2 %v360_v37 }
  0x29   : > { %348 = vmatpush.msra.mxu1 %v323_v21 }
  0x2a   : > { %390 = vmatpush.msra.mxu2 %v359_v38 }
  0x2b   : > { %349 = vmatpush.msra.mxu1 %v322_v22 }
  0x2d   : > { %350 = vmatpush.msra.mxu1 %v321_v23 }
  0x2f   : > { %351 = vmatpush.msra.mxu1 %v320_v24 }
  0x31   : > { %352 = vmatpush.msra.mxu1 %v319_v25 }
  0x33   : > { %353 = vmatpush.msra.mxu1 %v318_v26 }
  0xa4   : > { %v314_v33 = vpop.f32.mrf.mxu0 }
  0xa5   : > { %v315_v34 = vadd.f32 %v524_v32, %v314_v33 }
  0xa7   : > { %v317_v35 = vmax.f32 %v315_v34, 0.0 }
  0xa9   : > { %354 = vmatmul.f32.vlgmr.msra.gmra.mxu1 %v317_v35 }
 0x126   : > { %v355_v40 = vpop.f32.mrf.mxu1 }
 0x127   : > { %v356_v41 = vadd.f32 %v525_v39, %v355_v40 }
 0x129   : > { %v358_v42 = vmax.f32 %v356_v41, 0.0 }
 0x12b   : > { %480 = vmatmul.msk.f32.vlgmr.msra.gmra.mxu2 %vm371_vm2, %v358_v42 }
 0x1ae   : > { %v392_v44 = vpop.f32.mrf.mxu2 }
 0x1af   : > { %v393_v45 = vadd.f32 %v526_v43, %v392_v44 }
 0x1b1   : > { %396 = vst.msk [vmem:[%s269_s29] sm:$0xff] %vm395_vm3, %v393_v45 }
 0x1b2   : > { %554 = shalt.err (!%p551_p3)
}
 0x1b3   : > { %485 = dma.vmem_to_hbm [thread:$0]  (%p669_p5), %s411_s16, 128, %s413_s17, %s398_s18  }
 0x1b4 PF: > { %p491_p4 = scmp.ge.s32.totalorder %s589_s27, 2  ;;  %s424_s15 = sand.u32 1, %s577_s24  }
 0x1b5   : > { %s425_s9 = scalar_lea.sflag [#allocation3], %s424_s15 }
 0x1b6   : > { %p488_p7 = pnand %p491_p4, %p673_p6 }
 0x1b8   : > { %p489_p8 = pneg %p488_p7 }
 0x1ba   : > { %572 = dma.done.wait (%p489_p8), %s425_s9, 128  }
 0x1bb   : > { %574 = vsyncadd (%p489_p8), %s425_s9, 4294967168  ;;  %p17_p9 = scmp.ge.s32.totalorder %s656_s30, 4   ;;  %s837_s24 = smov %s581_s25 }
 0x1bc   : > { %s838_s25 = smov %s585_s26  ;;  %s839_s26 = smov %s667_s10 }
 0x1bd   : > { %s840_s27 = smov %s656_s30  ;;  %19 = sbr.rel (!%p17_p9) target bundleno = 3 (0x3), region = 83 }
 0x1c2   :  { %431 = vsyncpa [#allocation3], 1 }
 0x1c3   :  { %433 = vsyncpa [#allocation3 + $0x1], 1 }

</bundles_post_ra>
